<compile_context>
chip_gen: v7x
topology: tpu7x:2x2x1
jax: 0.10.0
libtpu: 0.0.40
codegen_flags: <defaults>
</compile_context>

<pallas_src>
import functools
import math

import jax
import jax.numpy as jnp
from jax import lax
from jax.experimental import pallas as pl
from jax.experimental.pallas import tpu as pltpu


def _rdb_conv_kernel(x_ref, w_ref, b_ref, o_ref, patch_ref, *, H, W, C, F):
    """One batch element.

    x_ref     : (1, C, H*W)      input, channels on sublanes, spatial on lanes
    w_ref     : (F, 25*C)        folded 5x5 weights, rows ordered (kh,kw,c)
    b_ref     : (F, 1)           folded bias
    o_ref     : (1, C+F, H*W)    [x ; ReLU(conv(x))]  (fused channel concat)
    patch_ref : (25*C, H*W)      VMEM scratch for the im2col patch
    """
    HW = H * W
    x2d = x_ref[0]                                        # (C, HW) f32

    # Flat spatial index -> (row, col) masks without integer division.
    flat = lax.broadcasted_iota(jnp.int32, (1, HW), 1)
    if W & (W - 1) == 0:                                  # power-of-two fast path
        col = flat & (W - 1)
    else:
        col = flat % W

    # Build the im2col patch: one lane roll (XLU slot) + boundary mask per tap.
    # Tap (kh, kw) reads x[c, y+kh-2, x'+kw-2] with out-of-range -> 0 ("same" pad).
    for kh in range(5):
        dy = kh - 2
        for kw in range(5):
            dx = kw - 2
            off = dy * W + dx
            if off == 0:
                shifted = x2d
            else:
                shifted = pltpu.roll(x2d, shift=(-off) % HW, axis=1)

            mask = None
            if dy != 0:
                # row + dy in [0, H)  <=>  flat in [max(0,-dy)*W, min(H, H-dy)*W)
                lo = max(0, -dy) * W
                hi = min(H, H - dy) * W
                mask = (flat >= lo) & (flat < hi)
            if dx != 0:
                cmask = (col >= -dx) if dx < 0 else (col < W - dx)
                mask = cmask if mask is None else (mask & cmask)
            if mask is not None:
                shifted = jnp.where(mask, shifted, 0.0)

            t = kh * 5 + kw
            patch_ref[t * C:(t + 1) * C, :] = shifted

    # Single MXU contraction over K = 25*C, fp32 accumulation; bias + ReLU fused.
    acc = jnp.dot(w_ref[...], patch_ref[...],
                  preferred_element_type=jnp.float32)      # (F, HW)
    acc = jnp.maximum(acc + b_ref[...], 0.0)

    # Fused concat: passthrough input channels, then the conv output channels.
    o_ref[0, 0:C, :] = x2d.astype(o_ref.dtype)
    o_ref[0, C:C + F, :] = acc.astype(o_ref.dtype)


def rdb_conv_forward(x_nchw, w1, b1, w3, b3, w5, b5):
    """RDB_Conv forward.  x_nchw: (N, C, H, W) f32.  Returns (N, C+F, H, W)."""
    N, C, H, W = x_nchw.shape
    F = w1.shape[0]
    HW = H * W

    # ---- fold conv1 / conv3 / conv5 into one 5x5 kernel (plain-JAX glue) ----
    # PyTorch conv weights are (F, C, kh, kw).
    w_comb = w5.astype(jnp.float32)
    w_comb = w_comb.at[:, :, 1:4, 1:4].add(w3)             # 3x3 centered
    w_comb = w_comb.at[:, :, 2:3, 2:3].add(w1)             # 1x1 centered
    # Reorder to match patch row ordering (kh, kw, c): w2d[f, (kh*5+kw)*C + c].
    w2d = jnp.transpose(w_comb, (0, 2, 3, 1)).reshape(F, 25 * C)
    b2d = (b1 + b3 + b5).reshape(F, 1).astype(jnp.float32)

    # Free reshape: keep NCHW, flatten spatial onto the lane axis.
    x2d = x_nchw.reshape(N, C, HW)

    kernel = functools.partial(_rdb_conv_kernel, H=H, W=W, C=C, F=F)

    out = pl.pallas_call(
        kernel,
        out_shape=jax.ShapeDtypeStruct((N, C + F, HW), x_nchw.dtype),
        grid_spec=pltpu.PrefetchScalarGridSpec(
            num_scalar_prefetch=0,
            grid=(N,),
            in_specs=[
                pl.BlockSpec((1, C, HW), lambda n: (n, 0, 0)),
                pl.BlockSpec((F, 25 * C), lambda n: (0, 0)),
                pl.BlockSpec((F, 1), lambda n: (0, 0)),
            ],
            out_specs=pl.BlockSpec((1, C + F, HW), lambda n: (n, 0, 0)),
            scratch_shapes=[pltpu.VMEM((25 * C, HW), jnp.float32)],
        ),
        compiler_params=pltpu.CompilerParams(
            dimension_semantics=("parallel",)),
    )(x2d, w2d, b2d)

    # Free reshape back to NCHW (contiguous split of the last axis).
    return out.reshape(N, C + F, H, W)


def _reference(x_nchw, w1, b1, w3, b3, w5, b5):
    """Pure-JAX reference matching the PyTorch module (for verification)."""
    dn = lax.conv_dimension_numbers(x_nchw.shape, w1.shape,
                                    ("NCHW", "OIHW", "NCHW"))

    def conv(w, b, pad):
        y = lax.conv_general_dilated(x_nchw, w, (1, 1),
                                     ((pad, pad), (pad, pad)),
                                     dimension_numbers=dn)
        return y + b.reshape(1, -1, 1, 1)

    out = conv(w1, b1, 0) + conv(w3, b3, 1) + conv(w5, b5, 2)
    out = jnp.maximum(out, 0.0)
    return jnp.concatenate([x_nchw, out], axis=1)


if __name__ == "__main__":
    N, C, H, W = 2, 4, 16, 16   # input (NCHW, like PyTorch)
    F = 8                       # n_feat

    key = jax.random.PRNGKey(0)
    kx, k1, k2, k3, k4, k5, k6 = jax.random.split(key, 7)

    x = jax.random.normal(kx, (N, C, H, W), dtype=jnp.float32)
    # PyTorch Conv2d weight shapes: (F, C, kh, kw)
    w1 = jax.random.normal(k1, (F, C, 1, 1), dtype=jnp.float32) * 0.1
    b1 = jax.random.normal(k2, (F,), dtype=jnp.float32) * 0.1
    w3 = jax.random.normal(k3, (F, C, 3, 3), dtype=jnp.float32) * 0.1
    b3 = jax.random.normal(k4, (F,), dtype=jnp.float32) * 0.1
    w5 = jax.random.normal(k5, (F, C, 5, 5), dtype=jnp.float32) * 0.1
    b5 = jax.random.normal(k6, (F,), dtype=jnp.float32) * 0.1

    out = rdb_conv_forward(x, w1, b1, w3, b3, w5, b5)
    out = jax.block_until_ready(out)

    ref = jax.block_until_ready(_reference(x, w1, b1, w3, b3, w5, b5))
    assert out.shape == (N, C + F, H, W), out.shape
    assert jnp.allclose(out, ref, atol=1e-4, rtol=1e-4), "mismatch vs reference"

    print("KERNEL_OK")
</pallas_src>

<mosaic_0001>
module attributes {stable_mosaic.version = 11 : i64} {
  func.func @_rdb_conv_kernel(%arg0: i32, %arg1: memref<1x4x256xf32, #tpu.memory_space<vmem>>, %arg2: memref<8x100xf32, #tpu.memory_space<vmem>>, %arg3: memref<8x1xf32, #tpu.memory_space<vmem>>, %arg4: memref<1x12x256xf32, #tpu.memory_space<vmem>>, %arg5: memref<100x256xf32, #tpu.memory_space<vmem>>) attributes {dimension_semantics = [#tpu.dimension_semantics<parallel>], iteration_bounds = array<i64: 2>, scalar_prefetch = 0 : i64, scratch_operands = 1 : i64, tpu.core_type = #tpu.core_type<tc>, window_params = [{transform_indices = @transform_0, window_bounds = array<i64: 1, 4, 256>}, {pipeline_mode = #tpu.pipeline_mode<synchronous>, transform_indices = @transform_1, window_bounds = array<i64: 8, 100>}, {pipeline_mode = #tpu.pipeline_mode<synchronous>, transform_indices = @transform_2, window_bounds = array<i64: 8, 1>}, {transform_indices = @transform_3, window_bounds = array<i64: 1, 12, 256>}]} {
    %c0 = arith.constant 0 : index
    %c0_0 = arith.constant 0 : index
    %c0_1 = arith.constant 0 : index
    %0 = vector.load %arg1[%c0, %c0_0, %c0_1] : memref<1x4x256xf32, #tpu.memory_space<vmem>>, vector<1x4x256xf32>
    %1 = vector.shape_cast %0 : vector<1x4x256xf32> to vector<4x256xf32>
    %2 = tpu.iota {dimensions = array<i32: 1>} : vector<1x256xi32>
    %c15_i32 = arith.constant 15 : i32
    %3 = vector.broadcast %c15_i32 : i32 to vector<1x256xi32>
    %4 = arith.andi %2, %3 : vector<1x256xi32>
    %c34_i32 = arith.constant 34 : i32
    %5 = tpu.dynamic_rotate %1 by %c34_i32 dim 1 : vector<4x256xf32>, i32 -> vector<4x256xf32>
    %c32_i32 = arith.constant 32 : i32
    %6 = vector.broadcast %c32_i32 : i32 to vector<1x256xi32>
    %7 = arith.cmpi sge, %2, %6 : vector<1x256xi32>
    %c256_i32 = arith.constant 256 : i32
    %8 = vector.broadcast %c256_i32 : i32 to vector<1x256xi32>
    %9 = arith.cmpi slt, %2, %8 : vector<1x256xi32>
    %10 = arith.andi %7, %9 : vector<1x256xi1>
    %c2_i32 = arith.constant 2 : i32
    %11 = vector.broadcast %c2_i32 : i32 to vector<1x256xi32>
    %12 = arith.cmpi sge, %4, %11 : vector<1x256xi32>
    %13 = arith.andi %10, %12 : vector<1x256xi1>
    %cst = arith.constant 0.000000e+00 : f32
    %14 = vector.shape_cast %13 : vector<1x256xi1> to vector<1x256xi1>
    %15 = vector.broadcast %14 : vector<1x256xi1> to vector<4x256xi1>
    %16 = vector.broadcast %cst : f32 to vector<4x256xf32>
    %17 = arith.select %15, %5, %16 : vector<4x256xi1>, vector<4x256xf32>
    %c0_2 = arith.constant 0 : index
    %c0_3 = arith.constant 0 : index
    %18 = vector.load %arg5[%c0_2, %c0_3] : memref<100x256xf32, #tpu.memory_space<vmem>>, vector<4x256xf32>
    tpu.vector_store %arg5[%c0_2, %c0_3], %17 {strides = array<i32>} : memref<100x256xf32, #tpu.memory_space<vmem>>, vector<4x256xf32>,
    %c33_i32 = arith.constant 33 : i32
    %19 = tpu.dynamic_rotate %1 by %c33_i32 dim 1 : vector<4x256xf32>, i32 -> vector<4x256xf32>
    %c32_i32_4 = arith.constant 32 : i32
    %20 = vector.broadcast %c32_i32_4 : i32 to vector<1x256xi32>
    %21 = arith.cmpi sge, %2, %20 : vector<1x256xi32>
    %c256_i32_5 = arith.constant 256 : i32
    %22 = vector.broadcast %c256_i32_5 : i32 to vector<1x256xi32>
    %23 = arith.cmpi slt, %2, %22 : vector<1x256xi32>
    %24 = arith.andi %21, %23 : vector<1x256xi1>
    %c1_i32 = arith.constant 1 : i32
    %25 = vector.broadcast %c1_i32 : i32 to vector<1x256xi32>
    %26 = arith.cmpi sge, %4, %25 : vector<1x256xi32>
    %27 = arith.andi %24, %26 : vector<1x256xi1>
    %cst_6 = arith.constant 0.000000e+00 : f32
    %28 = vector.shape_cast %27 : vector<1x256xi1> to vector<1x256xi1>
    %29 = vector.broadcast %28 : vector<1x256xi1> to vector<4x256xi1>
    %30 = vector.broadcast %cst_6 : f32 to vector<4x256xf32>
    %31 = arith.select %29, %19, %30 : vector<4x256xi1>, vector<4x256xf32>
    %c4 = arith.constant 4 : index
    %c0_7 = arith.constant 0 : index
    %32 = vector.load %arg5[%c4, %c0_7] : memref<100x256xf32, #tpu.memory_space<vmem>>, vector<4x256xf32>
    tpu.vector_store %arg5[%c4, %c0_7], %31 {strides = array<i32>} : memref<100x256xf32, #tpu.memory_space<vmem>>, vector<4x256xf32>,
    %c32_i32_8 = arith.constant 32 : i32
    %33 = tpu.dynamic_rotate %1 by %c32_i32_8 dim 1 : vector<4x256xf32>, i32 -> vector<4x256xf32>
    %c32_i32_9 = arith.constant 32 : i32
    %34 = vector.broadcast %c32_i32_9 : i32 to vector<1x256xi32>
    %35 = arith.cmpi sge, %2, %34 : vector<1x256xi32>
    %c256_i32_10 = arith.constant 256 : i32
    %36 = vector.broadcast %c256_i32_10 : i32 to vector<1x256xi32>
    %37 = arith.cmpi slt, %2, %36 : vector<1x256xi32>
    %38 = arith.andi %35, %37 : vector<1x256xi1>
    %cst_11 = arith.constant 0.000000e+00 : f32
    %39 = vector.shape_cast %38 : vector<1x256xi1> to vector<1x256xi1>
    %40 = vector.broadcast %39 : vector<1x256xi1> to vector<4x256xi1>
    %41 = vector.broadcast %cst_11 : f32 to vector<4x256xf32>
    %42 = arith.select %40, %33, %41 : vector<4x256xi1>, vector<4x256xf32>
    %c8 = arith.constant 8 : index
    %c0_12 = arith.constant 0 : index
    %43 = vector.load %arg5[%c8, %c0_12] : memref<100x256xf32, #tpu.memory_space<vmem>>, vector<4x256xf32>
    tpu.vector_store %arg5[%c8, %c0_12], %42 {strides = array<i32>} : memref<100x256xf32, #tpu.memory_space<vmem>>, vector<4x256xf32>,
    %c31_i32 = arith.constant 31 : i32
    %44 = tpu.dynamic_rotate %1 by %c31_i32 dim 1 : vector<4x256xf32>, i32 -> vector<4x256xf32>
    %c32_i32_13 = arith.constant 32 : i32
    %45 = vector.broadcast %c32_i32_13 : i32 to vector<1x256xi32>
    %46 = arith.cmpi sge, %2, %45 : vector<1x256xi32>
    %c256_i32_14 = arith.constant 256 : i32
    %47 = vector.broadcast %c256_i32_14 : i32 to vector<1x256xi32>
    %48 = arith.cmpi slt, %2, %47 : vector<1x256xi32>
    %49 = arith.andi %46, %48 : vector<1x256xi1>
    %c15_i32_15 = arith.constant 15 : i32
    %50 = vector.broadcast %c15_i32_15 : i32 to vector<1x256xi32>
    %51 = arith.cmpi slt, %4, %50 : vector<1x256xi32>
    %52 = arith.andi %49, %51 : vector<1x256xi1>
    %cst_16 = arith.constant 0.000000e+00 : f32
    %53 = vector.shape_cast %52 : vector<1x256xi1> to vector<1x256xi1>
    %54 = vector.broadcast %53 : vector<1x256xi1> to vector<4x256xi1>
    %55 = vector.broadcast %cst_16 : f32 to vector<4x256xf32>
    %56 = arith.select %54, %44, %55 : vector<4x256xi1>, vector<4x256xf32>
    %c12 = arith.constant 12 : index
    %c0_17 = arith.constant 0 : index
    %57 = vector.load %arg5[%c12, %c0_17] : memref<100x256xf32, #tpu.memory_space<vmem>>, vector<4x256xf32>
    tpu.vector_store %arg5[%c12, %c0_17], %56 {strides = array<i32>} : memref<100x256xf32, #tpu.memory_space<vmem>>, vector<4x256xf32>,
    %c30_i32 = arith.constant 30 : i32
    %58 = tpu.dynamic_rotate %1 by %c30_i32 dim 1 : vector<4x256xf32>, i32 -> vector<4x256xf32>
    %c32_i32_18 = arith.constant 32 : i32
    %59 = vector.broadcast %c32_i32_18 : i32 to vector<1x256xi32>
    %60 = arith.cmpi sge, %2, %59 : vector<1x256xi32>
    %c256_i32_19 = arith.constant 256 : i32
    %61 = vector.broadcast %c256_i32_19 : i32 to vector<1x256xi32>
    %62 = arith.cmpi slt, %2, %61 : vector<1x256xi32>
    %63 = arith.andi %60, %62 : vector<1x256xi1>
    %c14_i32 = arith.constant 14 : i32
    %64 = vector.broadcast %c14_i32 : i32 to vector<1x256xi32>
    %65 = arith.cmpi slt, %4, %64 : vector<1x256xi32>
    %66 = arith.andi %63, %65 : vector<1x256xi1>
    %cst_20 = arith.constant 0.000000e+00 : f32
    %67 = vector.shape_cast %66 : vector<1x256xi1> to vector<1x256xi1>
    %68 = vector.broadcast %67 : vector<1x256xi1> to vector<4x256xi1>
    %69 = vector.broadcast %cst_20 : f32 to vector<4x256xf32>
    %70 = arith.select %68, %58, %69 : vector<4x256xi1>, vector<4x256xf32>
    %c16 = arith.constant 16 : index
    %c0_21 = arith.constant 0 : index
    %71 = vector.load %arg5[%c16, %c0_21] : memref<100x256xf32, #tpu.memory_space<vmem>>, vector<4x256xf32>
    tpu.vector_store %arg5[%c16, %c0_21], %70 {strides = array<i32>} : memref<100x256xf32, #tpu.memory_space<vmem>>, vector<4x256xf32>,
    %c18_i32 = arith.constant 18 : i32
    %72 = tpu.dynamic_rotate %1 by %c18_i32 dim 1 : vector<4x256xf32>, i32 -> vector<4x256xf32>
    %c16_i32 = arith.constant 16 : i32
    %73 = vector.broadcast %c16_i32 : i32 to vector<1x256xi32>
    %74 = arith.cmpi sge, %2, %73 : vector<1x256xi32>
    %c256_i32_22 = arith.constant 256 : i32
    %75 = vector.broadcast %c256_i32_22 : i32 to vector<1x256xi32>
    %76 = arith.cmpi slt, %2, %75 : vector<1x256xi32>
    %77 = arith.andi %74, %76 : vector<1x256xi1>
    %c2_i32_23 = arith.constant 2 : i32
    %78 = vector.broadcast %c2_i32_23 : i32 to vector<1x256xi32>
    %79 = arith.cmpi sge, %4, %78 : vector<1x256xi32>
    %80 = arith.andi %77, %79 : vector<1x256xi1>
    %cst_24 = arith.constant 0.000000e+00 : f32
    %81 = vector.shape_cast %80 : vector<1x256xi1> to vector<1x256xi1>
    %82 = vector.broadcast %81 : vector<1x256xi1> to vector<4x256xi1>
    %83 = vector.broadcast %cst_24 : f32 to vector<4x256xf32>
    %84 = arith.select %82, %72, %83 : vector<4x256xi1>, vector<4x256xf32>
    %c20 = arith.constant 20 : index
    %c0_25 = arith.constant 0 : index
    %85 = vector.load %arg5[%c20, %c0_25] : memref<100x256xf32, #tpu.memory_space<vmem>>, vector<4x256xf32>
    tpu.vector_store %arg5[%c20, %c0_25], %84 {strides = array<i32>} : memref<100x256xf32, #tpu.memory_space<vmem>>, vector<4x256xf32>,
    %c17_i32 = arith.constant 17 : i32
    %86 = tpu.dynamic_rotate %1 by %c17_i32 dim 1 : vector<4x256xf32>, i32 -> vector<4x256xf32>
    %c16_i32_26 = arith.constant 16 : i32
    %87 = vector.broadcast %c16_i32_26 : i32 to vector<1x256xi32>
    %88 = arith.cmpi sge, %2, %87 : vector<1x256xi32>
    %c256_i32_27 = arith.constant 256 : i32
    %89 = vector.broadcast %c256_i32_27 : i32 to vector<1x256xi32>
    %90 = arith.cmpi slt, %2, %89 : vector<1x256xi32>
    %91 = arith.andi %88, %90 : vector<1x256xi1>
    %c1_i32_28 = arith.constant 1 : i32
    %92 = vector.broadcast %c1_i32_28 : i32 to vector<1x256xi32>
    %93 = arith.cmpi sge, %4, %92 : vector<1x256xi32>
    %94 = arith.andi %91, %93 : vector<1x256xi1>
    %cst_29 = arith.constant 0.000000e+00 : f32
    %95 = vector.shape_cast %94 : vector<1x256xi1> to vector<1x256xi1>
    %96 = vector.broadcast %95 : vector<1x256xi1> to vector<4x256xi1>
    %97 = vector.broadcast %cst_29 : f32 to vector<4x256xf32>
    %98 = arith.select %96, %86, %97 : vector<4x256xi1>, vector<4x256xf32>
    %c24 = arith.constant 24 : index
    %c0_30 = arith.constant 0 : index
    %99 = vector.load %arg5[%c24, %c0_30] : memref<100x256xf32, #tpu.memory_space<vmem>>, vector<4x256xf32>
    tpu.vector_store %arg5[%c24, %c0_30], %98 {strides = array<i32>} : memref<100x256xf32, #tpu.memory_space<vmem>>, vector<4x256xf32>,
    %c16_i32_31 = arith.constant 16 : i32
    %100 = tpu.dynamic_rotate %1 by %c16_i32_31 dim 1 : vector<4x256xf32>, i32 -> vector<4x256xf32>
    %c16_i32_32 = arith.constant 16 : i32
    %101 = vector.broadcast %c16_i32_32 : i32 to vector<1x256xi32>
    %102 = arith.cmpi sge, %2, %101 : vector<1x256xi32>
    %c256_i32_33 = arith.constant 256 : i32
    %103 = vector.broadcast %c256_i32_33 : i32 to vector<1x256xi32>
    %104 = arith.cmpi slt, %2, %103 : vector<1x256xi32>
    %105 = arith.andi %102, %104 : vector<1x256xi1>
    %cst_34 = arith.constant 0.000000e+00 : f32
    %106 = vector.shape_cast %105 : vector<1x256xi1> to vector<1x256xi1>
    %107 = vector.broadcast %106 : vector<1x256xi1> to vector<4x256xi1>
    %108 = vector.broadcast %cst_34 : f32 to vector<4x256xf32>
    %109 = arith.select %107, %100, %108 : vector<4x256xi1>, vector<4x256xf32>
    %c28 = arith.constant 28 : index
    %c0_35 = arith.constant 0 : index
    %110 = vector.load %arg5[%c28, %c0_35] : memref<100x256xf32, #tpu.memory_space<vmem>>, vector<4x256xf32>
    tpu.vector_store %arg5[%c28, %c0_35], %109 {strides = array<i32>} : memref<100x256xf32, #tpu.memory_space<vmem>>, vector<4x256xf32>,
    %c15_i32_36 = arith.constant 15 : i32
    %111 = tpu.dynamic_rotate %1 by %c15_i32_36 dim 1 : vector<4x256xf32>, i32 -> vector<4x256xf32>
    %c16_i32_37 = arith.constant 16 : i32
    %112 = vector.broadcast %c16_i32_37 : i32 to vector<1x256xi32>
    %113 = arith.cmpi sge, %2, %112 : vector<1x256xi32>
    %c256_i32_38 = arith.constant 256 : i32
    %114 = vector.broadcast %c256_i32_38 : i32 to vector<1x256xi32>
    %115 = arith.cmpi slt, %2, %114 : vector<1x256xi32>
    %116 = arith.andi %113, %115 : vector<1x256xi1>
    %c15_i32_39 = arith.constant 15 : i32
    %117 = vector.broadcast %c15_i32_39 : i32 to vector<1x256xi32>
    %118 = arith.cmpi slt, %4, %117 : vector<1x256xi32>
    %119 = arith.andi %116, %118 : vector<1x256xi1>
    %cst_40 = arith.constant 0.000000e+00 : f32
    %120 = vector.shape_cast %119 : vector<1x256xi1> to vector<1x256xi1>
    %121 = vector.broadcast %120 : vector<1x256xi1> to vector<4x256xi1>
    %122 = vector.broadcast %cst_40 : f32 to vector<4x256xf32>
    %123 = arith.select %121, %111, %122 : vector<4x256xi1>, vector<4x256xf32>
    %c32 = arith.constant 32 : index
    %c0_41 = arith.constant 0 : index
    %124 = vector.load %arg5[%c32, %c0_41] : memref<100x256xf32, #tpu.memory_space<vmem>>, vector<4x256xf32>
    tpu.vector_store %arg5[%c32, %c0_41], %123 {strides = array<i32>} : memref<100x256xf32, #tpu.memory_space<vmem>>, vector<4x256xf32>,
    %c14_i32_42 = arith.constant 14 : i32
    %125 = tpu.dynamic_rotate %1 by %c14_i32_42 dim 1 : vector<4x256xf32>, i32 -> vector<4x256xf32>
    %c16_i32_43 = arith.constant 16 : i32
    %126 = vector.broadcast %c16_i32_43 : i32 to vector<1x256xi32>
    %127 = arith.cmpi sge, %2, %126 : vector<1x256xi32>
    %c256_i32_44 = arith.constant 256 : i32
    %128 = vector.broadcast %c256_i32_44 : i32 to vector<1x256xi32>
    %129 = arith.cmpi slt, %2, %128 : vector<1x256xi32>
    %130 = arith.andi %127, %129 : vector<1x256xi1>
    %c14_i32_45 = arith.constant 14 : i32
    %131 = vector.broadcast %c14_i32_45 : i32 to vector<1x256xi32>
    %132 = arith.cmpi slt, %4, %131 : vector<1x256xi32>
    %133 = arith.andi %130, %132 : vector<1x256xi1>
    %cst_46 = arith.constant 0.000000e+00 : f32
    %134 = vector.shape_cast %133 : vector<1x256xi1> to vector<1x256xi1>
    %135 = vector.broadcast %134 : vector<1x256xi1> to vector<4x256xi1>
    %136 = vector.broadcast %cst_46 : f32 to vector<4x256xf32>
    %137 = arith.select %135, %125, %136 : vector<4x256xi1>, vector<4x256xf32>
    %c36 = arith.constant 36 : index
    %c0_47 = arith.constant 0 : index
    %138 = vector.load %arg5[%c36, %c0_47] : memref<100x256xf32, #tpu.memory_space<vmem>>, vector<4x256xf32>
    tpu.vector_store %arg5[%c36, %c0_47], %137 {strides = array<i32>} : memref<100x256xf32, #tpu.memory_space<vmem>>, vector<4x256xf32>,
    %c2_i32_48 = arith.constant 2 : i32
    %139 = tpu.dynamic_rotate %1 by %c2_i32_48 dim 1 : vector<4x256xf32>, i32 -> vector<4x256xf32>
    %c2_i32_49 = arith.constant 2 : i32
    %140 = vector.broadcast %c2_i32_49 : i32 to vector<1x256xi32>
    %141 = arith.cmpi sge, %4, %140 : vector<1x256xi32>
    %cst_50 = arith.constant 0.000000e+00 : f32
    %142 = vector.shape_cast %141 : vector<1x256xi1> to vector<1x256xi1>
    %143 = vector.broadcast %142 : vector<1x256xi1> to vector<4x256xi1>
    %144 = vector.broadcast %cst_50 : f32 to vector<4x256xf32>
    %145 = arith.select %143, %139, %144 : vector<4x256xi1>, vector<4x256xf32>
    %c40 = arith.constant 40 : index
    %c0_51 = arith.constant 0 : index
    %146 = vector.load %arg5[%c40, %c0_51] : memref<100x256xf32, #tpu.memory_space<vmem>>, vector<4x256xf32>
    tpu.vector_store %arg5[%c40, %c0_51], %145 {strides = array<i32>} : memref<100x256xf32, #tpu.memory_space<vmem>>, vector<4x256xf32>,
    %c1_i32_52 = arith.constant 1 : i32
    %147 = tpu.dynamic_rotate %1 by %c1_i32_52 dim 1 : vector<4x256xf32>, i32 -> vector<4x256xf32>
    %c1_i32_53 = arith.constant 1 : i32
    %148 = vector.broadcast %c1_i32_53 : i32 to vector<1x256xi32>
    %149 = arith.cmpi sge, %4, %148 : vector<1x256xi32>
    %cst_54 = arith.constant 0.000000e+00 : f32
    %150 = vector.shape_cast %149 : vector<1x256xi1> to vector<1x256xi1>
    %151 = vector.broadcast %150 : vector<1x256xi1> to vector<4x256xi1>
    %152 = vector.broadcast %cst_54 : f32 to vector<4x256xf32>
    %153 = arith.select %151, %147, %152 : vector<4x256xi1>, vector<4x256xf32>
    %c44 = arith.constant 44 : index
    %c0_55 = arith.constant 0 : index
    %154 = vector.load %arg5[%c44, %c0_55] : memref<100x256xf32, #tpu.memory_space<vmem>>, vector<4x256xf32>
    tpu.vector_store %arg5[%c44, %c0_55], %153 {strides = array<i32>} : memref<100x256xf32, #tpu.memory_space<vmem>>, vector<4x256xf32>,
    %c48 = arith.constant 48 : index
    %c0_56 = arith.constant 0 : index
    %155 = vector.load %arg5[%c48, %c0_56] : memref<100x256xf32, #tpu.memory_space<vmem>>, vector<4x256xf32>
    tpu.vector_store %arg5[%c48, %c0_56], %1 {strides = array<i32>} : memref<100x256xf32, #tpu.memory_space<vmem>>, vector<4x256xf32>,
    %c255_i32 = arith.constant 255 : i32
    %156 = tpu.dynamic_rotate %1 by %c255_i32 dim 1 : vector<4x256xf32>, i32 -> vector<4x256xf32>
    %c15_i32_57 = arith.constant 15 : i32
    %157 = vector.broadcast %c15_i32_57 : i32 to vector<1x256xi32>
    %158 = arith.cmpi slt, %4, %157 : vector<1x256xi32>
    %cst_58 = arith.constant 0.000000e+00 : f32
    %159 = vector.shape_cast %158 : vector<1x256xi1> to vector<1x256xi1>
    %160 = vector.broadcast %159 : vector<1x256xi1> to vector<4x256xi1>
    %161 = vector.broadcast %cst_58 : f32 to vector<4x256xf32>
    %162 = arith.select %160, %156, %161 : vector<4x256xi1>, vector<4x256xf32>
    %c52 = arith.constant 52 : index
    %c0_59 = arith.constant 0 : index
    %163 = vector.load %arg5[%c52, %c0_59] : memref<100x256xf32, #tpu.memory_space<vmem>>, vector<4x256xf32>
    tpu.vector_store %arg5[%c52, %c0_59], %162 {strides = array<i32>} : memref<100x256xf32, #tpu.memory_space<vmem>>, vector<4x256xf32>,
    %c254_i32 = arith.constant 254 : i32
    %164 = tpu.dynamic_rotate %1 by %c254_i32 dim 1 : vector<4x256xf32>, i32 -> vector<4x256xf32>
    %c14_i32_60 = arith.constant 14 : i32
    %165 = vector.broadcast %c14_i32_60 : i32 to vector<1x256xi32>
    %166 = arith.cmpi slt, %4, %165 : vector<1x256xi32>
    %cst_61 = arith.constant 0.000000e+00 : f32
    %167 = vector.shape_cast %166 : vector<1x256xi1> to vector<1x256xi1>
    %168 = vector.broadcast %167 : vector<1x256xi1> to vector<4x256xi1>
    %169 = vector.broadcast %cst_61 : f32 to vector<4x256xf32>
    %170 = arith.select %168, %164, %169 : vector<4x256xi1>, vector<4x256xf32>
    %c56 = arith.constant 56 : index
    %c0_62 = arith.constant 0 : index
    %171 = vector.load %arg5[%c56, %c0_62] : memref<100x256xf32, #tpu.memory_space<vmem>>, vector<4x256xf32>
    tpu.vector_store %arg5[%c56, %c0_62], %170 {strides = array<i32>} : memref<100x256xf32, #tpu.memory_space<vmem>>, vector<4x256xf32>,
    %c242_i32 = arith.constant 242 : i32
    %172 = tpu.dynamic_rotate %1 by %c242_i32 dim 1 : vector<4x256xf32>, i32 -> vector<4x256xf32>
    %c0_i32 = arith.constant 0 : i32
    %173 = vector.broadcast %c0_i32 : i32 to vector<1x256xi32>
    %174 = arith.cmpi sge, %2, %173 : vector<1x256xi32>
    %c240_i32 = arith.constant 240 : i32
    %175 = vector.broadcast %c240_i32 : i32 to vector<1x256xi32>
    %176 = arith.cmpi slt, %2, %175 : vector<1x256xi32>
    %177 = arith.andi %174, %176 : vector<1x256xi1>
    %c2_i32_63 = arith.constant 2 : i32
    %178 = vector.broadcast %c2_i32_63 : i32 to vector<1x256xi32>
    %179 = arith.cmpi sge, %4, %178 : vector<1x256xi32>
    %180 = arith.andi %177, %179 : vector<1x256xi1>
    %cst_64 = arith.constant 0.000000e+00 : f32
    %181 = vector.shape_cast %180 : vector<1x256xi1> to vector<1x256xi1>
    %182 = vector.broadcast %181 : vector<1x256xi1> to vector<4x256xi1>
    %183 = vector.broadcast %cst_64 : f32 to vector<4x256xf32>
    %184 = arith.select %182, %172, %183 : vector<4x256xi1>, vector<4x256xf32>
    %c60 = arith.constant 60 : index
    %c0_65 = arith.constant 0 : index
    %185 = vector.load %arg5[%c60, %c0_65] : memref<100x256xf32, #tpu.memory_space<vmem>>, vector<4x256xf32>
    tpu.vector_store %arg5[%c60, %c0_65], %184 {strides = array<i32>} : memref<100x256xf32, #tpu.memory_space<vmem>>, vector<4x256xf32>,
    %c241_i32 = arith.constant 241 : i32
    %186 = tpu.dynamic_rotate %1 by %c241_i32 dim 1 : vector<4x256xf32>, i32 -> vector<4x256xf32>
    %c0_i32_66 = arith.constant 0 : i32
    %187 = vector.broadcast %c0_i32_66 : i32 to vector<1x256xi32>
    %188 = arith.cmpi sge, %2, %187 : vector<1x256xi32>
    %c240_i32_67 = arith.constant 240 : i32
    %189 = vector.broadcast %c240_i32_67 : i32 to vector<1x256xi32>
    %190 = arith.cmpi slt, %2, %189 : vector<1x256xi32>
    %191 = arith.andi %188, %190 : vector<1x256xi1>
    %c1_i32_68 = arith.constant 1 : i32
    %192 = vector.broadcast %c1_i32_68 : i32 to vector<1x256xi32>
    %193 = arith.cmpi sge, %4, %192 : vector<1x256xi32>
    %194 = arith.andi %191, %193 : vector<1x256xi1>
    %cst_69 = arith.constant 0.000000e+00 : f32
    %195 = vector.shape_cast %194 : vector<1x256xi1> to vector<1x256xi1>
    %196 = vector.broadcast %195 : vector<1x256xi1> to vector<4x256xi1>
    %197 = vector.broadcast %cst_69 : f32 to vector<4x256xf32>
    %198 = arith.select %196, %186, %197 : vector<4x256xi1>, vector<4x256xf32>
    %c64 = arith.constant 64 : index
    %c0_70 = arith.constant 0 : index
    %199 = vector.load %arg5[%c64, %c0_70] : memref<100x256xf32, #tpu.memory_space<vmem>>, vector<4x256xf32>
    tpu.vector_store %arg5[%c64, %c0_70], %198 {strides = array<i32>} : memref<100x256xf32, #tpu.memory_space<vmem>>, vector<4x256xf32>,
    %c240_i32_71 = arith.constant 240 : i32
    %200 = tpu.dynamic_rotate %1 by %c240_i32_71 dim 1 : vector<4x256xf32>, i32 -> vector<4x256xf32>
    %c0_i32_72 = arith.constant 0 : i32
    %201 = vector.broadcast %c0_i32_72 : i32 to vector<1x256xi32>
    %202 = arith.cmpi sge, %2, %201 : vector<1x256xi32>
    %c240_i32_73 = arith.constant 240 : i32
    %203 = vector.broadcast %c240_i32_73 : i32 to vector<1x256xi32>
    %204 = arith.cmpi slt, %2, %203 : vector<1x256xi32>
    %205 = arith.andi %202, %204 : vector<1x256xi1>
    %cst_74 = arith.constant 0.000000e+00 : f32
    %206 = vector.shape_cast %205 : vector<1x256xi1> to vector<1x256xi1>
    %207 = vector.broadcast %206 : vector<1x256xi1> to vector<4x256xi1>
    %208 = vector.broadcast %cst_74 : f32 to vector<4x256xf32>
    %209 = arith.select %207, %200, %208 : vector<4x256xi1>, vector<4x256xf32>
    %c68 = arith.constant 68 : index
    %c0_75 = arith.constant 0 : index
    %210 = vector.load %arg5[%c68, %c0_75] : memref<100x256xf32, #tpu.memory_space<vmem>>, vector<4x256xf32>
    tpu.vector_store %arg5[%c68, %c0_75], %209 {strides = array<i32>} : memref<100x256xf32, #tpu.memory_space<vmem>>, vector<4x256xf32>,
    %c239_i32 = arith.constant 239 : i32
    %211 = tpu.dynamic_rotate %1 by %c239_i32 dim 1 : vector<4x256xf32>, i32 -> vector<4x256xf32>
    %c0_i32_76 = arith.constant 0 : i32
    %212 = vector.broadcast %c0_i32_76 : i32 to vector<1x256xi32>
    %213 = arith.cmpi sge, %2, %212 : vector<1x256xi32>
    %c240_i32_77 = arith.constant 240 : i32
    %214 = vector.broadcast %c240_i32_77 : i32 to vector<1x256xi32>
    %215 = arith.cmpi slt, %2, %214 : vector<1x256xi32>
    %216 = arith.andi %213, %215 : vector<1x256xi1>
    %c15_i32_78 = arith.constant 15 : i32
    %217 = vector.broadcast %c15_i32_78 : i32 to vector<1x256xi32>
    %218 = arith.cmpi slt, %4, %217 : vector<1x256xi32>
    %219 = arith.andi %216, %218 : vector<1x256xi1>
    %cst_79 = arith.constant 0.000000e+00 : f32
    %220 = vector.shape_cast %219 : vector<1x256xi1> to vector<1x256xi1>
    %221 = vector.broadcast %220 : vector<1x256xi1> to vector<4x256xi1>
    %222 = vector.broadcast %cst_79 : f32 to vector<4x256xf32>
    %223 = arith.select %221, %211, %222 : vector<4x256xi1>, vector<4x256xf32>
    %c72 = arith.constant 72 : index
    %c0_80 = arith.constant 0 : index
    %224 = vector.load %arg5[%c72, %c0_80] : memref<100x256xf32, #tpu.memory_space<vmem>>, vector<4x256xf32>
    tpu.vector_store %arg5[%c72, %c0_80], %223 {strides = array<i32>} : memref<100x256xf32, #tpu.memory_space<vmem>>, vector<4x256xf32>,
    %c238_i32 = arith.constant 238 : i32
    %225 = tpu.dynamic_rotate %1 by %c238_i32 dim 1 : vector<4x256xf32>, i32 -> vector<4x256xf32>
    %c0_i32_81 = arith.constant 0 : i32
    %226 = vector.broadcast %c0_i32_81 : i32 to vector<1x256xi32>
    %227 = arith.cmpi sge, %2, %226 : vector<1x256xi32>
    %c240_i32_82 = arith.constant 240 : i32
    %228 = vector.broadcast %c240_i32_82 : i32 to vector<1x256xi32>
    %229 = arith.cmpi slt, %2, %228 : vector<1x256xi32>
    %230 = arith.andi %227, %229 : vector<1x256xi1>
    %c14_i32_83 = arith.constant 14 : i32
    %231 = vector.broadcast %c14_i32_83 : i32 to vector<1x256xi32>
    %232 = arith.cmpi slt, %4, %231 : vector<1x256xi32>
    %233 = arith.andi %230, %232 : vector<1x256xi1>
    %cst_84 = arith.constant 0.000000e+00 : f32
    %234 = vector.shape_cast %233 : vector<1x256xi1> to vector<1x256xi1>
    %235 = vector.broadcast %234 : vector<1x256xi1> to vector<4x256xi1>
    %236 = vector.broadcast %cst_84 : f32 to vector<4x256xf32>
    %237 = arith.select %235, %225, %236 : vector<4x256xi1>, vector<4x256xf32>
    %c76 = arith.constant 76 : index
    %c0_85 = arith.constant 0 : index
    %238 = vector.load %arg5[%c76, %c0_85] : memref<100x256xf32, #tpu.memory_space<vmem>>, vector<4x256xf32>
    tpu.vector_store %arg5[%c76, %c0_85], %237 {strides = array<i32>} : memref<100x256xf32, #tpu.memory_space<vmem>>, vector<4x256xf32>,
    %c226_i32 = arith.constant 226 : i32
    %239 = tpu.dynamic_rotate %1 by %c226_i32 dim 1 : vector<4x256xf32>, i32 -> vector<4x256xf32>
    %c0_i32_86 = arith.constant 0 : i32
    %240 = vector.broadcast %c0_i32_86 : i32 to vector<1x256xi32>
    %241 = arith.cmpi sge, %2, %240 : vector<1x256xi32>
    %c224_i32 = arith.constant 224 : i32
    %242 = vector.broadcast %c224_i32 : i32 to vector<1x256xi32>
    %243 = arith.cmpi slt, %2, %242 : vector<1x256xi32>
    %244 = arith.andi %241, %243 : vector<1x256xi1>
    %c2_i32_87 = arith.constant 2 : i32
    %245 = vector.broadcast %c2_i32_87 : i32 to vector<1x256xi32>
    %246 = arith.cmpi sge, %4, %245 : vector<1x256xi32>
    %247 = arith.andi %244, %246 : vector<1x256xi1>
    %cst_88 = arith.constant 0.000000e+00 : f32
    %248 = vector.shape_cast %247 : vector<1x256xi1> to vector<1x256xi1>
    %249 = vector.broadcast %248 : vector<1x256xi1> to vector<4x256xi1>
    %250 = vector.broadcast %cst_88 : f32 to vector<4x256xf32>
    %251 = arith.select %249, %239, %250 : vector<4x256xi1>, vector<4x256xf32>
    %c80 = arith.constant 80 : index
    %c0_89 = arith.constant 0 : index
    %252 = vector.load %arg5[%c80, %c0_89] : memref<100x256xf32, #tpu.memory_space<vmem>>, vector<4x256xf32>
    tpu.vector_store %arg5[%c80, %c0_89], %251 {strides = array<i32>} : memref<100x256xf32, #tpu.memory_space<vmem>>, vector<4x256xf32>,
    %c225_i32 = arith.constant 225 : i32
    %253 = tpu.dynamic_rotate %1 by %c225_i32 dim 1 : vector<4x256xf32>, i32 -> vector<4x256xf32>
    %c0_i32_90 = arith.constant 0 : i32
    %254 = vector.broadcast %c0_i32_90 : i32 to vector<1x256xi32>
    %255 = arith.cmpi sge, %2, %254 : vector<1x256xi32>
    %c224_i32_91 = arith.constant 224 : i32
    %256 = vector.broadcast %c224_i32_91 : i32 to vector<1x256xi32>
    %257 = arith.cmpi slt, %2, %256 : vector<1x256xi32>
    %258 = arith.andi %255, %257 : vector<1x256xi1>
    %c1_i32_92 = arith.constant 1 : i32
    %259 = vector.broadcast %c1_i32_92 : i32 to vector<1x256xi32>
    %260 = arith.cmpi sge, %4, %259 : vector<1x256xi32>
    %261 = arith.andi %258, %260 : vector<1x256xi1>
    %cst_93 = arith.constant 0.000000e+00 : f32
    %262 = vector.shape_cast %261 : vector<1x256xi1> to vector<1x256xi1>
    %263 = vector.broadcast %262 : vector<1x256xi1> to vector<4x256xi1>
    %264 = vector.broadcast %cst_93 : f32 to vector<4x256xf32>
    %265 = arith.select %263, %253, %264 : vector<4x256xi1>, vector<4x256xf32>
    %c84 = arith.constant 84 : index
    %c0_94 = arith.constant 0 : index
    %266 = vector.load %arg5[%c84, %c0_94] : memref<100x256xf32, #tpu.memory_space<vmem>>, vector<4x256xf32>
    tpu.vector_store %arg5[%c84, %c0_94], %265 {strides = array<i32>} : memref<100x256xf32, #tpu.memory_space<vmem>>, vector<4x256xf32>,
    %c224_i32_95 = arith.constant 224 : i32
    %267 = tpu.dynamic_rotate %1 by %c224_i32_95 dim 1 : vector<4x256xf32>, i32 -> vector<4x256xf32>
    %c0_i32_96 = arith.constant 0 : i32
    %268 = vector.broadcast %c0_i32_96 : i32 to vector<1x256xi32>
    %269 = arith.cmpi sge, %2, %268 : vector<1x256xi32>
    %c224_i32_97 = arith.constant 224 : i32
    %270 = vector.broadcast %c224_i32_97 : i32 to vector<1x256xi32>
    %271 = arith.cmpi slt, %2, %270 : vector<1x256xi32>
    %272 = arith.andi %269, %271 : vector<1x256xi1>
    %cst_98 = arith.constant 0.000000e+00 : f32
    %273 = vector.shape_cast %272 : vector<1x256xi1> to vector<1x256xi1>
    %274 = vector.broadcast %273 : vector<1x256xi1> to vector<4x256xi1>
    %275 = vector.broadcast %cst_98 : f32 to vector<4x256xf32>
    %276 = arith.select %274, %267, %275 : vector<4x256xi1>, vector<4x256xf32>
    %c88 = arith.constant 88 : index
    %c0_99 = arith.constant 0 : index
    %277 = vector.load %arg5[%c88, %c0_99] : memref<100x256xf32, #tpu.memory_space<vmem>>, vector<4x256xf32>
    tpu.vector_store %arg5[%c88, %c0_99], %276 {strides = array<i32>} : memref<100x256xf32, #tpu.memory_space<vmem>>, vector<4x256xf32>,
    %c223_i32 = arith.constant 223 : i32
    %278 = tpu.dynamic_rotate %1 by %c223_i32 dim 1 : vector<4x256xf32>, i32 -> vector<4x256xf32>
    %c0_i32_100 = arith.constant 0 : i32
    %279 = vector.broadcast %c0_i32_100 : i32 to vector<1x256xi32>
    %280 = arith.cmpi sge, %2, %279 : vector<1x256xi32>
    %c224_i32_101 = arith.constant 224 : i32
    %281 = vector.broadcast %c224_i32_101 : i32 to vector<1x256xi32>
    %282 = arith.cmpi slt, %2, %281 : vector<1x256xi32>
    %283 = arith.andi %280, %282 : vector<1x256xi1>
    %c15_i32_102 = arith.constant 15 : i32
    %284 = vector.broadcast %c15_i32_102 : i32 to vector<1x256xi32>
    %285 = arith.cmpi slt, %4, %284 : vector<1x256xi32>
    %286 = arith.andi %283, %285 : vector<1x256xi1>
    %cst_103 = arith.constant 0.000000e+00 : f32
    %287 = vector.shape_cast %286 : vector<1x256xi1> to vector<1x256xi1>
    %288 = vector.broadcast %287 : vector<1x256xi1> to vector<4x256xi1>
    %289 = vector.broadcast %cst_103 : f32 to vector<4x256xf32>
    %290 = arith.select %288, %278, %289 : vector<4x256xi1>, vector<4x256xf32>
    %c92 = arith.constant 92 : index
    %c0_104 = arith.constant 0 : index
    %291 = vector.load %arg5[%c92, %c0_104] : memref<100x256xf32, #tpu.memory_space<vmem>>, vector<4x256xf32>
    tpu.vector_store %arg5[%c92, %c0_104], %290 {strides = array<i32>} : memref<100x256xf32, #tpu.memory_space<vmem>>, vector<4x256xf32>,
    %c222_i32 = arith.constant 222 : i32
    %292 = tpu.dynamic_rotate %1 by %c222_i32 dim 1 : vector<4x256xf32>, i32 -> vector<4x256xf32>
    %c0_i32_105 = arith.constant 0 : i32
    %293 = vector.broadcast %c0_i32_105 : i32 to vector<1x256xi32>
    %294 = arith.cmpi sge, %2, %293 : vector<1x256xi32>
    %c224_i32_106 = arith.constant 224 : i32
    %295 = vector.broadcast %c224_i32_106 : i32 to vector<1x256xi32>
    %296 = arith.cmpi slt, %2, %295 : vector<1x256xi32>
    %297 = arith.andi %294, %296 : vector<1x256xi1>
    %c14_i32_107 = arith.constant 14 : i32
    %298 = vector.broadcast %c14_i32_107 : i32 to vector<1x256xi32>
    %299 = arith.cmpi slt, %4, %298 : vector<1x256xi32>
    %300 = arith.andi %297, %299 : vector<1x256xi1>
    %cst_108 = arith.constant 0.000000e+00 : f32
    %301 = vector.shape_cast %300 : vector<1x256xi1> to vector<1x256xi1>
    %302 = vector.broadcast %301 : vector<1x256xi1> to vector<4x256xi1>
    %303 = vector.broadcast %cst_108 : f32 to vector<4x256xf32>
    %304 = arith.select %302, %292, %303 : vector<4x256xi1>, vector<4x256xf32>
    %c96 = arith.constant 96 : index
    %c0_109 = arith.constant 0 : index
    %305 = vector.load %arg5[%c96, %c0_109] : memref<100x256xf32, #tpu.memory_space<vmem>>, vector<4x256xf32>
    tpu.vector_store %arg5[%c96, %c0_109], %304 {strides = array<i32>} : memref<100x256xf32, #tpu.memory_space<vmem>>, vector<4x256xf32>,
    %c0_110 = arith.constant 0 : index
    %c0_111 = arith.constant 0 : index
    %306 = vector.load %arg2[%c0_110, %c0_111] : memref<8x100xf32, #tpu.memory_space<vmem>>, vector<8x100xf32>
    %c0_112 = arith.constant 0 : index
    %c0_113 = arith.constant 0 : index
    %307 = vector.load %arg5[%c0_112, %c0_113] : memref<100x256xf32, #tpu.memory_space<vmem>>, vector<100x256xf32>
    %cst_114 = arith.constant dense<0.000000e+00> : vector<8x256xf32>
    %308 = tpu.matmul %306, %307, %cst_114 {dimension_numbers = #tpu.dot_dimension_numbers<[1], [0], [0], [1], [0, 0, 1, 1], [], []>} : vector<8x100xf32>, vector<100x256xf32>, vector<8x256xf32> -> vector<8x256xf32>
    %c0_115 = arith.constant 0 : index
    %c0_116 = arith.constant 0 : index
    %309 = vector.load %arg3[%c0_115, %c0_116] : memref<8x1xf32, #tpu.memory_space<vmem>>, vector<8x1xf32>
    %310 = vector.broadcast %309 : vector<8x1xf32> to vector<8x256xf32>
    %311 = arith.addf %308, %310 : vector<8x256xf32>
    %cst_117 = arith.constant 0.000000e+00 : f32
    %312 = vector.broadcast %cst_117 : f32 to vector<8x256xf32>
    %313 = arith.maximumf %311, %312 : vector<8x256xf32>
    %c0_118 = arith.constant 0 : index
    %c0_119 = arith.constant 0 : index
    %c0_120 = arith.constant 0 : index
    %314 = vector.load %arg4[%c0_118, %c0_119, %c0_120] : memref<1x12x256xf32, #tpu.memory_space<vmem>>, vector<1x4x256xf32>
    %315 = vector.shape_cast %314 : vector<1x4x256xf32> to vector<4x256xf32>
    %316 = vector.shape_cast %1 : vector<4x256xf32> to vector<1x4x256xf32>
    tpu.vector_store %arg4[%c0_118, %c0_119, %c0_120], %316 {strides = array<i32>} : memref<1x12x256xf32, #tpu.memory_space<vmem>>, vector<1x4x256xf32>,
    %c0_121 = arith.constant 0 : index
    %c4_122 = arith.constant 4 : index
    %c0_123 = arith.constant 0 : index
    %317 = vector.load %arg4[%c0_121, %c4_122, %c0_123] : memref<1x12x256xf32, #tpu.memory_space<vmem>>, vector<1x8x256xf32>
    %318 = vector.shape_cast %317 : vector<1x8x256xf32> to vector<8x256xf32>
    %319 = vector.shape_cast %313 : vector<8x256xf32> to vector<1x8x256xf32>
    tpu.vector_store %arg4[%c0_121, %c4_122, %c0_123], %319 {strides = array<i32>} : memref<1x12x256xf32, #tpu.memory_space<vmem>>, vector<1x8x256xf32>,
    return
  }
  func.func @transform_0(%arg0: i32) -> (i32, i32, i32) {
    %c0_i32 = arith.constant 0 : i32
    %c0_i32_0 = arith.constant 0 : i32
    %c0_i32_1 = arith.constant 0 : i32
    return %arg0, %c0_i32, %c0_i32_0 : i32, i32, i32
  }
  func.func @transform_1(%arg0: i32) -> (i32, i32) {
    %c0_i32 = arith.constant 0 : i32
    %c0_i32_0 = arith.constant 0 : i32
    %c0_i32_1 = arith.constant 0 : i32
    return %c0_i32, %c0_i32_0 : i32, i32
  }
  func.func @transform_2(%arg0: i32) -> (i32, i32) {
    %c0_i32 = arith.constant 0 : i32
    %c0_i32_0 = arith.constant 0 : i32
    %c0_i32_1 = arith.constant 0 : i32
    return %c0_i32, %c0_i32_0 : i32, i32
  }
  func.func @transform_3(%arg0: i32) -> (i32, i32, i32) {
    %c0_i32 = arith.constant 0 : i32
    %c0_i32_0 = arith.constant 0 : i32
    %c0_i32_1 = arith.constant 0 : i32
    return %arg0, %c0_i32, %c0_i32_0 : i32, i32, i32
  }
}

</mosaic_0001>

<bundles_post_ra>
// kernel: tpu_custom_call.1
= control target key start
LH: loop header
LB: loop body
LE: loop exit
PB: predicated region body
PF: predicated region fallthrough
CT: control target
= control target key end

     0   :  { %8 = vsyncpa [#allocation4], 0  ;;  %s1469_s0 = inlined_call_operand.hbm [shape: f32[2,4,256], index: 0, kind: input, shape index: {}]   ;;  %s1470_s1 = inlined_call_operand.vmem [shape: f32[8,100], index: 1, kind: input, shape index: {}]   ;;  %s1471_s2 = inlined_call_operand.vmem [shape: f32[8,1], index: 2, kind: input, shape index: {}]   ;;  %s1472_s3 = inlined_call_operand.vmem [shape: f32[2,12,256], index: 3, kind: output, shape index: {}]  }
   0x1   :  { %10 = vsyncpa [#allocation4 + $0x1], 0  ;;  %s1109_s12 = smov 0   ;;  %s1111_s13 = smov 0  }
   0x2   :  { %s1113_s14 = smov 0   ;;  %s1115_s15 = smov 0  }
   0x3 LB: > { %s1128_s16 = sadd.s32 4294967295, %s1060_s15   ;;  %s1131_s17 = sadd.s32 1, %s1060_s15   ;;  %s1060_s15 = sphi %s1115_s15, %s1484_s15   ;;  %s1056_s14 = sphi %s1113_s14, %s1483_s14   ;;  %s1052_s13 = sphi %s1111_s13, %s1482_s13   ;;  %s1048_s12 = sphi %s1109_s12, %s1481_s12  }
   0x4   : > { %s20_s18 = ssub.s32 %s1060_s15, %s1131_s17  ;;  %s23_s19 = sadd.s32 1, %s1056_s14 }
   0x5   : > { %p21_p0 = scmp.eq.s32.totalorder %s20_s18, 0  ;;  %p30_p1 = scmp.ne.s32.totalorder %s1056_s14, %s1052_s13 }
   0x6   : > { %p31_p2 = scmp.eq.s32.totalorder %s1060_s15, 0  ;;  %p36_p3 = scmp.ne.s32.totalorder %s1052_s13, %s1048_s12 }
   0x7   : > { %s1141_s20 = scalar_select %p21_p0, %s1056_s14, %s23_s19  }
   0x8   : > { %p32_p4 = por %p31_p2, %p30_p1  ;;  %p37_p5 = scmp.eq.s32.totalorder %s1128_s16, 0 }
   0x9   : > { %p935_p6 = scmp.lt.s32.totalorder %s1060_s15, 2  ;;  %s134_s22 = sand.u32 1, %s1056_s14  }
   0xa   : > { %p1145_p7 = por %p37_p5, %p36_p3  ;;  %s891_s23 = sshll.u32 %s134_s22, 3 }
   0xb   : > { %s903_s24 = sshll.u32 %s1060_s15, 7  ;;  %s138_s28 = scalar_lea.vmem [#allocation3], %s891_s23 }
   0xc   : > { %s1154_s27 = scalar_lea.hbm %s1469_s0, %s903_s24  ;;  %s146_s29 = sshll.u32 %s138_s28, 4  ;;  %s1156_s29 = int_to_ptr.vmem [resolvable:$true] %s146_s29 }
   0xd   : > { %p1158_p8 = pnand %p935_p6, %p32_p4  ;;  %s135_s4 = scalar_lea.sflag [#allocation4], %s134_s22 }
   0xe   : > { %s996_s5 = scalar_lea.hbm %s1154_s27, 128  ;;  %s1001_s8 = scalar_lea.hbm %s1469_s0, 256 }
   0xf   : > { %p997_p11 = scmp.ne.s32.totalorder %s1154_s27, %s996_s5  ;;  %p998_p12 = pneg %p1158_p8 }
  0x10   : > { %p1002_p1 = scmp.lt.u32.totalorder %s1154_s27, %s1469_s0  ;;  %p1003_p2 = scmp.lt.u32.totalorder %s1001_s8, %s996_s5 }
  0x11   : > { %p999_p13 = pnand %p998_p12, %p997_p11  ;;  %p1005_p4 = scmp.lt.u32.totalorder %s996_s5, %s1154_s27 }
  0x12   : > { %p1004_p3 = por %p1003_p2, %p1002_p1 }
  0x13   : > { %p1000_p0 = pneg %p999_p13 }
  0x14   : > { %p1006_p5 = por %p1005_p4, %p1004_p3 }
  0x16   : > { %p1007_p6 = pnand %p1006_p5, %p1000_p0 }
  0x18   : > { %1010 = shalt.err (!%p1007_p6)
}
  0x19   : > { %s1011_s11 = scalar_lea.vmem %s1156_s29, 128  ;;  %s1062_s12 = smov [#allocation3]  }
  0x1a   : > { %p1012_p11 = scmp.ne.s32.totalorder %s1156_s29, %s1011_s11  ;;  %s1016_s18 = sshll.u32 %s1062_s12, 4  ;;  %s1017_s18 = int_to_ptr.vmem [resolvable:$false] %s1016_s18 }
  0x1b   : > { %s1018_s19 = scalar_lea.vmem %s1017_s18, 256  ;;  %p1019_p10 = scmp.lt.s32.totalorder %s1156_s29, %s1017_s18 }
  0x1c   : > { %p1014_p13 = pnand %p1012_p11, %p998_p12  ;;  %p1020_p1 = scmp.lt.s32.totalorder %s1018_s19, %s1011_s11 }
  0x1e   : > { %p1015_p9 = pneg %p1014_p13  ;;  %p1021_p2 = por %p1020_p1, %p1019_p10 }
  0x20   : > { %p1022_p3 = pnand %p1021_p2, %p1015_p9 }
  0x22   : > { %1025 = shalt.err (!%p1022_p3)
}
  0x23   : > { %934 = dma.hbm_to_vmem [thread:$0]  (!%p1158_p8), %s1154_s27, 128, %s1156_s29, %s135_s4  }
  0x24   : > { %p1475_p0 = scmp.lt.s32.totalorder %s1060_s15, 3  ;;  %p1476_p4 = scmp.ge.s32.totalorder %s1060_s15, 1 }
  0x26   : > { %p152_p12 = pnand %p1476_p4, %p1475_p0 }
  0x27   : > { %s157_s22 = sand.u32 (!%p152_p12), 1, %s1052_s13  }
  0x28   : > { %155 = sbr.rel (%p152_p12) target bundleno = 490 (0x1ea), region = 32  ;;  %s895_s23 = sshll.u32 (!%p152_p12), %s157_s22, 3 }
  0x29   : > { %s158_s24 = scalar_lea.sflag (!%p152_p12), [#allocation4], %s157_s22  ;;  %s161_s25 = scalar_lea.vmem (!%p152_p12), [#allocation3], %s895_s23 }
  0x2f   : > { %1043 = dma.done.wait (%p1145_p7), %s158_s24, 128  }
  0x30   : > { %1045 = vsyncadd (%p1145_p7), %s158_s24, 4294967168  ;;  %v1198_v0 = vld [vmem:[%s161_s25] sm:$0xff]  ;;  %s1063_s26 = smov 31   ;;  %s1064_s15 = smov 33   ;;  %v1087_v2 = vmov 0.0   ;;  %v719_v3 = vld [vmem:[%s1471_s2] sm:$0xff]  ;;  %v190_v5 = vlaneseq }
  0x31   : > { %263 = vrot.lane.b32.xlu1 %v1198_v0, %s1063_s26  ;;  %448 = vst [vmem:[#allocation2 + $0x60] sm:$0xf] %v1198_v0  ;;  %223 = vrot.lane.b32.xlu0 %v1198_v0, %s1064_s15  ;;  %v1205_v1 = vcombine.high %v1198_v0, %v1198_v0  ;;  %s1065_s27 = smov 34   ;;  %s1066_s21 = smov 32   ;;  %v1088_v4 = vmov 0  }
  0x32   : > { %s1067_s28 = smov 18   ;;  %s1068_s29 = smov 16   ;;  %800 = vmatprep.mubr.f32.mxu0 %v1087_v2  ;;  %994 = vset.pattern.permute.xlu0 %v1088_v4  ;;  %v1268_v6 = vand.u32 127, %v190_v5 }
  0x33   : > { %449 = vst [vmem:[#allocation2 + $0x68] sm:$0xf] %v1205_v1  ;;  %s1069_s30 = smov 30   ;;  %s1070_s4 = smov 17  }
  0x34   : > { %s1071_s5 = smov 14   ;;  %s1072_s6 = smov 1   ;;  %v1271_v7 = vadd.s32 128, %v1268_v6  ;;  %v1274_v8 = vand.u32 15, %v1268_v6  ;;  %vm205_vm0 = vcmp.ge.s32.totalorder %v1268_v6, 32  ;;  %vm267_vm2 = vcmp.lt.s32.totalorder %v1268_v6, 31 }
  0x35   : > { %198 = vrot.lane.b32.xlu0 %v1198_v0, %s1065_s27  ;;  %265 = vrot.lane.b32.xlu1 %v1205_v1, %s1063_s26  ;;  %s1073_s7 = smov 15   ;;  %s1074_s8 = smov 2   ;;  %vm202_vm7 = vcmp.lt.s32.totalorder %v1268_v6, 34  ;;  %vm227_vm9 = vcmp.lt.s32.totalorder %v1268_v6, 33  ;;  %vm252_vm13 = vcmp.lt.s32.totalorder %v1268_v6, 32  ;;  %vm314_vm14 = vcmp.ge.s32.totalorder %v1268_v6, 16 }
  0x36   : > { %s1075_s9 = smov 127   ;;  %s1076_s10 = smov 114   ;;  %v1277_v9 = vand.u32 15, %v1271_v7  ;;  %vm270_vm1 = vcmp.lt.s32.totalorder %v1274_v8, 15  ;;  %vm211_vm5 = vcmp.ge.s32.totalorder %v1274_v8, 2  ;;  %vm230_vm6 = vcmp.ge.s32.totalorder %v1274_v8, 1 }
  0x37   : > { %s1077_s11 = smov 126   ;;  %s1078_s12 = smov 112   ;;  %vm272_vm4 = vmand %vm205_vm0, %vm270_vm1  ;;  %vm311_vm15 = vcmp.lt.s32.totalorder %v1268_v6, 18 }
  0x38   : > { %s1079_s18 = smov 110   ;;  %s1080_s19 = smov 113   ;;  %vm271_vm3 = vcmp.lt.s32.totalorder %v1277_v9, 15  ;;  %vm1296_vm8 = vmand %vm205_vm0, %vm211_vm5  ;;  %vm212_vm10 = vcmp.ge.s32.totalorder %v1277_v9, 2  ;;  %vm231_vm11 = vcmp.ge.s32.totalorder %v1277_v9, 1 }
  0x39   : > { %200 = vrot.lane.b32.xlu1 %v1205_v1, %s1065_s27  ;;  %225 = vrot.lane.b32.xlu0 %v1205_v1, %s1064_s15  ;;  %s1081_s22 = smov 111   ;;  %s1082_s23 = smov 97   ;;  %vm1307_vm12 = vmand %vm205_vm0, %vm230_vm6 }
  0x3a   : > { %s1083_s24 = smov 95   ;;  %s1084_s25 = smov 98  }
  0x3b   : > { %s1085_s26 = smov 96   ;;  %s1086_s15 = smov 94  }
  0x3c   : > { %p184_p7 = scmp.lt.s32.totalorder %s1128_s16, 1 }
  0x3d   : > { %250 = vrot.lane.b32.xlu1 %v1205_v1, %s1066_s21  ;;  %248 = vrot.lane.b32.xlu0 %v1198_v0, %s1066_s21 }
  0x3e   : > { %s1486_s16 = smov (!%p184_p7, %s1128_s16), 1 }
  0x41   : > { %309 = vrot.lane.b32.xlu1 %v1205_v1, %s1067_s28  ;;  %307 = vrot.lane.b32.xlu0 %v1198_v0, %s1067_s28  ;;  %s904_s28 = sshll.u32 %s1486_s16, 5 }
  0x45   : > { %353 = vrot.lane.b32.xlu1 %v1205_v1, %s1068_s29  ;;  %351 = vrot.lane.b32.xlu0 %v1198_v0, %s1068_s29 }
  0x49   : > { %290 = vrot.lane.b32.xlu1 %v1205_v1, %s1069_s30  ;;  %288 = vrot.lane.b32.xlu0 %v1198_v0, %s1069_s30 }
  0x4d   : > { %336 = vrot.lane.b32.xlu1 %v1205_v1, %s1070_s4  ;;  %334 = vrot.lane.b32.xlu0 %v1198_v0, %s1070_s4  ;;  %s1262_s4 = scalar_lea.vmem %s1472_s3, %s904_s28 }
  0x4e   : > { %809 = vst [vmem:[%s1262_s4] sm:$0xf] %v1198_v0  ;;  %810 = vst [vmem:[%s1262_s4 + $0x8] sm:$0xf] %v1205_v1 }
  0x51   : > { %391 = vrot.lane.b32.xlu1 %v1205_v1, %s1071_s5  ;;  %389 = vrot.lane.b32.xlu0 %v1198_v0, %s1071_s5 }
  0x55   : > { %429 = vrot.lane.b32.xlu1 %v1205_v1, %s1072_s6  ;;  %427 = vrot.lane.b32.xlu0 %v1198_v0, %s1072_s6 }
  0x59   : > { %374 = vrot.lane.b32.xlu1 %v1205_v1, %s1073_s7  ;;  %372 = vrot.lane.b32.xlu0 %v1198_v0, %s1073_s7 }
  0x5d   : > { %414 = vrot.lane.b32.xlu1 %v1205_v1, %s1074_s8  ;;  %412 = vrot.lane.b32.xlu0 %v1198_v0, %s1074_s8 }
  0x61   : > { %452 = vrot.lane.b32.xlu1 %v1205_v1, %s1075_s9  ;;  %450 = vrot.lane.b32.xlu0 %v1198_v0, %s1075_s9 }
  0x65   : > { %488 = vrot.lane.b32.xlu1 %v1205_v1, %s1076_s10  ;;  %486 = vrot.lane.b32.xlu0 %v1198_v0, %s1076_s10 }
  0x69   : > { %473 = vrot.lane.b32.xlu1 %v1205_v1, %s1077_s11  ;;  %471 = vrot.lane.b32.xlu0 %v1198_v0, %s1077_s11 }
  0x6d   : > { %534 = vrot.lane.b32.xlu1 %v1205_v1, %s1078_s12  ;;  %532 = vrot.lane.b32.xlu0 %v1198_v0, %s1078_s12 }
  0x71   : > { %572 = vrot.lane.b32.xlu1 %v1205_v1, %s1079_s18  ;;  %570 = vrot.lane.b32.xlu0 %v1198_v0, %s1079_s18 }
  0x75   : > { %517 = vrot.lane.b32.xlu1 %v1205_v1, %s1080_s19  ;;  %515 = vrot.lane.b32.xlu0 %v1198_v0, %s1080_s19 }
  0x79   : > { %555 = vrot.lane.b32.xlu1 %v1205_v1, %s1081_s22  ;;  %553 = vrot.lane.b32.xlu0 %v1198_v0, %s1081_s22 }
  0x7d   : > { %616 = vrot.lane.b32.xlu1 %v1205_v1, %s1082_s23  ;;  %614 = vrot.lane.b32.xlu0 %v1198_v0, %s1082_s23 }
  0x81   : > { %654 = vrot.lane.b32.xlu1 %v1205_v1, %s1083_s24  ;;  %652 = vrot.lane.b32.xlu0 %v1198_v0, %s1083_s24 }
  0x85   : > { %595 = vrot.lane.b32.xlu1 %v1205_v1, %s1084_s25  ;;  %593 = vrot.lane.b32.xlu0 %v1198_v0, %s1084_s25 }
  0x89   : > { %639 = vrot.lane.b32.xlu1 %v1205_v1, %s1085_s26  ;;  %637 = vrot.lane.b32.xlu0 %v1198_v0, %s1085_s26 }
  0x8d   : > { %677 = vrot.lane.b32.xlu1 %v1205_v1, %s1086_s15  ;;  %675 = vrot.lane.b32.xlu0 %v1198_v0, %s1086_s15 }
  0x91   : > { %722 = vperm.xlu0 %994, %v719_v3  }
  0xa3   : > { %v264_v10 = vpop.permute.xlu1 %263  ;;  %v224_v11 = vpop.permute.xlu0 %223 }
  0xa7   : > { %v199_v12 = vpop.permute.xlu0 %198  ;;  %v266_v13 = vpop.permute.xlu1 %265 }
  0xa8   : > { %v268_v14 = vsel %vm267_vm2, %v264_v10, %v266_v13  ;;  %v269_v15 = vsel %vm267_vm2, %v266_v13, %v264_v10  ;;  %vm318_vm2 = vmand %vm314_vm14, %vm211_vm5 }
  0xa9   : > { %v278_v16 = vsel %vm272_vm4, %v269_v15, 0.0  ;;  %v279_v17 = vsel %vm271_vm3, %v268_v14, 0.0  ;;  %vm355_vm4 = vcmp.lt.s32.totalorder %v1268_v6, 16 }
  0xaa   : > { %v282_v19 = vrot.slane %v278_v16, 4  ;;  %v283_v20 = vrot.slane %v279_v17, 4 }
  0xab   : > { %v201_v22 = vpop.permute.xlu1 %200  ;;  %v226_v23 = vpop.permute.xlu0 %225 }
  0xac   : > { %286 = vst [vmem:[#allocation2 + $0x10] sm:$0xf0] %v282_v19  ;;  %287 = vst [vmem:[#allocation2 + $0x18] sm:$0xf0] %v283_v20  ;;  %v203_v24 = vsel %vm202_vm7, %v199_v12, %v201_v22  ;;  %v204_v25 = vsel %vm202_vm7, %v201_v22, %v199_v12  ;;  %v228_v26 = vsel %vm227_vm9, %v224_v11, %v226_v23  ;;  %vm295_vm7 = vcmp.lt.s32.totalorder %v1274_v8, 14  ;;  %v692_v8 = vld [vmem:[%s1470_s1] sm:$0xff] }
  0xad   : > { %v229_v27 = vsel %vm227_vm9, %v226_v23, %v224_v11  ;;  %v219_v28 = vsel %vm1296_vm8, %v204_v25, 0.0  ;;  %v220_v29 = vsel %vm212_vm10, %v203_v24, 0.0  ;;  %v239_v31 = vsel %vm231_vm11, %v228_v26, 0.0 }
  0xae   : > { %v238_v30 = vsel %vm1307_vm12, %v229_v27, 0.0  ;;  %221 = vst [vmem:[#allocation2] sm:$0xf] %v219_v28  ;;  %222 = vst [vmem:[#allocation2 + $0x8] sm:$0xf] %v220_v29  ;;  %v243_v33 = vrot.slane %v239_v31, 4 }
  0xaf   : > { %v242_v32 = vrot.slane %v238_v30, 4  ;;  %v251_v34 = vpop.permute.xlu1 %250  ;;  %v249_v35 = vpop.permute.xlu0 %248  ;;  %vm292_vm8 = vcmp.lt.s32.totalorder %v1268_v6, 30  ;;  %vm296_vm9 = vcmp.lt.s32.totalorder %v1277_v9, 14  ;;  %vm297_vm12 = vmand %vm205_vm0, %vm295_vm7 }
  0xb0   : > { %247 = vst [vmem:[#allocation2 + $0x8] sm:$0xf0] %v243_v33  ;;  %v253_v36 = vsel %vm252_vm13, %v249_v35, %v251_v34  ;;  %v254_v37 = vsel %vm252_vm13, %v251_v34, %v249_v35  ;;  %vm338_vm13 = vcmp.lt.s32.totalorder %v1268_v6, 17 }
  0xb1   : > { %246 = vst [vmem:[#allocation2] sm:$0xf0] %v242_v32  ;;  %v259_v38 = vsel %vm205_vm0, %v254_v37, 0.0  ;;  %262 = vst [vmem:[#allocation2 + $0x18] sm:$0xf] %v253_v36 }
  0xb2   : > { %261 = vst [vmem:[#allocation2 + $0x10] sm:$0xf] %v259_v38  ;;  %vm341_vm0 = vmand %vm314_vm14, %vm230_vm6 }
  0xb3   : > { %v310_v39 = vpop.permute.xlu1 %309  ;;  %v308_v40 = vpop.permute.xlu0 %307 }
  0xb4   : > { %v312_v41 = vsel %vm311_vm15, %v308_v40, %v310_v39  ;;  %v313_v42 = vsel %vm311_vm15, %v310_v39, %v308_v40  ;;  %vm393_vm15 = vcmp.lt.s32.totalorder %v1268_v6, 14 }
  0xb5   : > { %v324_v43 = vsel %vm318_vm2, %v313_v42, 0.0  ;;  %v325_v44 = vsel %vm212_vm10, %v312_v41, 0.0  ;;  %vm396_vm2 = vmand %vm314_vm14, %vm295_vm7 }
  0xb6   : > { %v328_v45 = vrot.slane %v324_v43, 4  ;;  %v329_v46 = vrot.slane %v325_v44, 4 }
  0xb7   : > { %v354_v47 = vpop.permute.xlu1 %353  ;;  %v352_v48 = vpop.permute.xlu0 %351  ;;  %v694_v49 = vld [vmem:[#allocation2 + $0x8] sm:$0xff] }
  0xb8   : > { %332 = vst [vmem:[#allocation2 + $0x20] sm:$0xf0] %v328_v45  ;;  %333 = vst [vmem:[#allocation2 + $0x28] sm:$0xf0] %v329_v46  ;;  %v356_v50 = vsel %vm355_vm4, %v352_v48, %v354_v47  ;;  %v357_v51 = vsel %vm355_vm4, %v354_v47, %v352_v48  ;;  %v696_v52 = vld [vmem:[#allocation2 + $0x18] sm:$0xff]  ;;  %v693_v56 = vld [vmem:[#allocation2] sm:$0xff] }
  0xb9   : > { %v362_v53 = vsel %vm314_vm14, %v357_v51, 0.0  ;;  %v367_v54 = vrot.slane %v356_v50, 4  ;;  %v905_v55 = vpack.c.bf16 %v696_v52, %v694_v49  ;;  %v695_v57 = vld [vmem:[#allocation2 + $0x10] sm:$0xff]  ;;  %vm431_vm4 = vcmp.lt.s32.totalorder %v1268_v6, 1 }
  0xba   : > { %v366_v58 = vrot.slane %v362_v53, 4  ;;  %v907_v59 = vpack.c.bf16 %v695_v57, %v693_v56 }
  0xbb   : > { %371 = vst [vmem:[#allocation2 + $0x38] sm:$0xf0] %v367_v54  ;;  %v291_v60 = vpop.permute.xlu1 %290  ;;  %906 = vmatprep.subr.bf16.mxu0 %v905_v55  ;;  %v289_v61 = vpop.permute.xlu0 %288 }
  0xbc   : > { %370 = vst [vmem:[#allocation2 + $0x30] sm:$0xf0] %v366_v58  ;;  %v293_v62 = vsel %vm292_vm8, %v289_v61, %v291_v60  ;;  %v294_v63 = vsel %vm292_vm8, %v291_v60, %v289_v61  ;;  %908 = vmatpush1.bf16.msra.mxu0 %v907_v59  ;;  %vm376_vm8 = vcmp.lt.s32.totalorder %v1268_v6, 15 }
  0xbd   : > { %v303_v0 = vsel %vm297_vm12, %v294_v63, 0.0  ;;  %v304_v1 = vsel %vm296_vm9, %v293_v62, 0.0  ;;  %vm379_vm12 = vmand %vm314_vm14, %vm270_vm1  ;;  %vm454_vm14 = vcmp.lt.s32.totalorder %v1268_v6, 127 }
  0xbe   : > { %305 = vst [vmem:[#allocation2 + $0x20] sm:$0xf] %v303_v0  ;;  %306 = vst [vmem:[#allocation2 + $0x28] sm:$0xf] %v304_v1 }
  0xbf   : > { %v337_v2 = vpop.permute.xlu1 %336  ;;  %v335_v3 = vpop.permute.xlu0 %334 }
  0xc0   : > { %v339_v4 = vsel %vm338_vm13, %v335_v3, %v337_v2  ;;  %v340_v5 = vsel %vm338_vm13, %v337_v2, %v335_v3  ;;  %vm416_vm13 = vcmp.lt.s32.totalorder %v1268_v6, 2 }
  0xc1   : > { %v347_v10 = vsel %vm341_vm0, %v340_v5, 0.0  ;;  %v348_v11 = vsel %vm231_vm11, %v339_v4, 0.0  ;;  %vm496_vm0 = vcmp.lt.s32.totalorder %v1271_v7, 240 }
  0xc2   : > { %349 = vst [vmem:[#allocation2 + $0x30] sm:$0xf] %v347_v10  ;;  %350 = vst [vmem:[#allocation2 + $0x38] sm:$0xf] %v348_v11 }
  0xc3   : > { %v392_v12 = vpop.permute.xlu1 %391  ;;  %v390_v13 = vpop.permute.xlu0 %389 }
  0xc4   : > { %v394_v14 = vsel %vm393_vm15, %v390_v13, %v392_v12  ;;  %v395_v15 = vsel %vm393_vm15, %v392_v12, %v390_v13  ;;  %vm490_vm15 = vcmp.lt.s32.totalorder %v1268_v6, 114 }
  0xc5   : > { %v402_v16 = vsel %vm396_vm2, %v395_v15, 0.0  ;;  %v403_v17 = vsel %vm296_vm9, %v394_v14, 0.0  ;;  %v698_v24 = vld [vmem:[#allocation2 + $0x28] sm:$0xff]  ;;  %v697_v28 = vld [vmem:[#allocation2 + $0x20] sm:$0xff]  ;;  %vm500_vm2 = vmand %vm496_vm0, %vm212_vm10 }
  0xc6   : > { %v406_v18 = vrot.slane %v402_v16, 4  ;;  %v407_v19 = vrot.slane %v403_v17, 4 }
  0xc7   : > { %v430_v20 = vpop.permute.xlu1 %429  ;;  %v428_v21 = vpop.permute.xlu0 %427 }
  0xc8   : > { %410 = vst [vmem:[#allocation2 + $0x40] sm:$0xf0] %v406_v18  ;;  %411 = vst [vmem:[#allocation2 + $0x48] sm:$0xf0] %v407_v19  ;;  %v432_v22 = vsel %vm431_vm4, %v428_v21, %v430_v20  ;;  %v433_v23 = vsel %vm431_vm4, %v430_v20, %v428_v21  ;;  %vm475_vm4 = vcmp.lt.s32.totalorder %v1268_v6, 126 }
  0xc9   : > { %v438_v25 = vsel %vm230_vm6, %v433_v23, 0.0  ;;  %v439_v26 = vsel %vm231_vm11, %v432_v22, 0.0  ;;  %v700_v27 = vld [vmem:[#allocation2 + $0x38] sm:$0xff]  ;;  %v699_v29 = vld [vmem:[#allocation2 + $0x30] sm:$0xff] }
  0xca   : > { %v442_v30 = vrot.slane %v438_v25, 4  ;;  %v443_v31 = vrot.slane %v439_v26, 4  ;;  %v909_v32 = vpack.c.bf16 %v700_v27, %v698_v24  ;;  %v911_v33 = vpack.c.bf16 %v699_v29, %v697_v28 }
  0xcb   : > { %v375_v34 = vpop.permute.xlu1 %374  ;;  %v373_v35 = vpop.permute.xlu0 %372 }
  0xcc   : > { %446 = vst [vmem:[#allocation2 + $0x50] sm:$0xf0] %v442_v30  ;;  %447 = vst [vmem:[#allocation2 + $0x58] sm:$0xf0] %v443_v31  ;;  %v377_v36 = vsel %vm376_vm8, %v373_v35, %v375_v34  ;;  %v378_v37 = vsel %vm376_vm8, %v375_v34, %v373_v35  ;;  %910 = vmatprep.subr.bf16.mxu0 %v909_v32  ;;  %vm536_vm8 = vcmp.lt.s32.totalorder %v1268_v6, 112 }
  0xcd   : > { %v385_v38 = vsel %vm379_vm12, %v378_v37, 0.0  ;;  %v386_v39 = vsel %vm271_vm3, %v377_v36, 0.0  ;;  %912 = vmatpush1.bf16.msra.mxu0 %v911_v33  ;;  %vm574_vm12 = vcmp.lt.s32.totalorder %v1268_v6, 110 }
  0xce   : > { %387 = vst [vmem:[#allocation2 + $0x40] sm:$0xf] %v385_v38  ;;  %388 = vst [vmem:[#allocation2 + $0x48] sm:$0xf] %v386_v39 }
  0xcf   : > { %v415_v40 = vpop.permute.xlu1 %414  ;;  %v413_v41 = vpop.permute.xlu0 %412 }
  0xd0   : > { %v417_v42 = vsel %vm416_vm13, %v413_v41, %v415_v40  ;;  %v418_v43 = vsel %vm416_vm13, %v415_v40, %v413_v41  ;;  %vm578_vm13 = vmand %vm496_vm0, %vm296_vm9 }
  0xd1   : > { %v423_v44 = vsel %vm211_vm5, %v418_v43, 0.0  ;;  %v424_v45 = vsel %vm212_vm10, %v417_v42, 0.0 }
  0xd2   : > { %425 = vst [vmem:[#allocation2 + $0x50] sm:$0xf] %v423_v44  ;;  %426 = vst [vmem:[#allocation2 + $0x58] sm:$0xf] %v424_v45 }
  0xd3   : > { %v453_v46 = vpop.permute.xlu1 %452  ;;  %v451_v47 = vpop.permute.xlu0 %450 }
  0xd4   : > { %v455_v48 = vsel %vm454_vm14, %v451_v47, %v453_v46  ;;  %v456_v49 = vsel %vm454_vm14, %v453_v46, %v451_v47  ;;  %vm519_vm14 = vcmp.lt.s32.totalorder %v1268_v6, 113 }
  0xd5   : > { %v461_v50 = vsel %vm270_vm1, %v455_v48, 0.0  ;;  %v462_v51 = vsel %vm271_vm3, %v456_v49, 0.0  ;;  %v702_v58 = vld [vmem:[#allocation2 + $0x48] sm:$0xff]  ;;  %v701_v62 = vld [vmem:[#allocation2 + $0x40] sm:$0xff] }
  0xd6   : > { %v465_v52 = vrot.slane %v461_v50, 4  ;;  %v466_v53 = vrot.slane %v462_v51, 4 }
  0xd7   : > { %v489_v54 = vpop.permute.xlu1 %488  ;;  %v487_v55 = vpop.permute.xlu0 %486 }
  0xd8   : > { %469 = vst [vmem:[#allocation2 + $0x60] sm:$0xf0] %v465_v52  ;;  %470 = vst [vmem:[#allocation2 + $0x68] sm:$0xf0] %v466_v53  ;;  %v491_v56 = vsel %vm490_vm15, %v487_v55, %v489_v54  ;;  %v492_v57 = vsel %vm490_vm15, %v489_v54, %v487_v55 }
  0xd9   : > { %v505_v59 = vsel %vm211_vm5, %v491_v56, 0.0  ;;  %v506_v60 = vsel %vm500_vm2, %v492_v57, 0.0  ;;  %v704_v61 = vld [vmem:[#allocation2 + $0x58] sm:$0xff]  ;;  %v703_v63 = vld [vmem:[#allocation2 + $0x50] sm:$0xff]  ;;  %vm523_vm15 = vmand %vm496_vm0, %vm231_vm11  ;;  %vm557_vm2 = vcmp.lt.s32.totalorder %v1268_v6, 111 }
  0xda   : > { %v509_v0 = vrot.slane %v505_v59, 4  ;;  %v510_v1 = vrot.slane %v506_v60, 4  ;;  %v913_v2 = vpack.c.bf16 %v704_v61, %v702_v58  ;;  %v915_v3 = vpack.c.bf16 %v703_v63, %v701_v62 }
  0xdb   : > { %v474_v4 = vpop.permute.xlu1 %473  ;;  %v472_v5 = vpop.permute.xlu0 %471 }
  0xdc   : > { %513 = vst [vmem:[#allocation2 + $0x70] sm:$0xf0] %v509_v0  ;;  %514 = vst [vmem:[#allocation2 + $0x78] sm:$0xf0] %v510_v1  ;;  %v476_v10 = vsel %vm475_vm4, %v472_v5, %v474_v4  ;;  %v477_v11 = vsel %vm475_vm4, %v474_v4, %v472_v5  ;;  %914 = vmatprep.subr.bf16.mxu0 %v913_v2 }
  0xdd   : > { %v482_v12 = vsel %vm295_vm7, %v476_v10, 0.0  ;;  %v483_v13 = vsel %vm296_vm9, %v477_v11, 0.0  ;;  %916 = vmatpush1.bf16.msra.mxu0 %v915_v3  ;;  %vm561_vm4 = vmand %vm496_vm0, %vm271_vm3 }
  0xde   : > { %484 = vst [vmem:[#allocation2 + $0x70] sm:$0xf] %v482_v12  ;;  %485 = vst [vmem:[#allocation2 + $0x78] sm:$0xf] %v483_v13 }
  0xdf   : > { %v535_v14 = vpop.permute.xlu1 %534  ;;  %v533_v15 = vpop.permute.xlu0 %532  ;;  %v706_v25 = vld [vmem:[#allocation2 + $0x68] sm:$0xff]  ;;  %v705_v29 = vld [vmem:[#allocation2 + $0x60] sm:$0xff] }
  0xe0   : > { %v537_v16 = vsel %vm536_vm8, %v533_v15, %v535_v14  ;;  %v538_v17 = vsel %vm536_vm8, %v535_v14, %v533_v15  ;;  %vm601_vm8 = vcmp.lt.s32.totalorder %v1271_v7, 224 }
  0xe1   : > { %v544_v18 = vsel %vm496_vm0, %v538_v17, 0.0  ;;  %v547_v19 = vrot.slane %v537_v16, 4  ;;  %vm656_vm0 = vcmp.lt.s32.totalorder %v1268_v6, 95 }
  0xe2   : > { %v548_v20 = vrot.slane %v544_v18, 4 }
  0xe3   : > { %551 = vst [vmem:[#allocation2 + $0x80] sm:$0xf0] %v547_v19  ;;  %v573_v21 = vpop.permute.xlu1 %572  ;;  %v571_v22 = vpop.permute.xlu0 %570 }
  0xe4   : > { %552 = vst [vmem:[#allocation2 + $0x88] sm:$0xf0] %v548_v20  ;;  %v575_v23 = vsel %vm574_vm12, %v571_v22, %v573_v21  ;;  %v576_v24 = vsel %vm574_vm12, %v573_v21, %v571_v22  ;;  %vm618_vm12 = vcmp.lt.s32.totalorder %v1268_v6, 97 }
  0xe5   : > { %v583_v26 = vsel %vm295_vm7, %v575_v23, 0.0  ;;  %v584_v27 = vsel %vm578_vm13, %v576_v24, 0.0  ;;  %v708_v28 = vld [vmem:[#allocation2 + $0x78] sm:$0xff]  ;;  %v707_v30 = vld [vmem:[#allocation2 + $0x70] sm:$0xff]  ;;  %vm622_vm13 = vmand %vm601_vm8, %vm231_vm11  ;;  %vm729_vm11 = vcmask 1043456  }
  0xe6   : > { %v587_v31 = vrot.slane %v583_v26, 4  ;;  %v588_v32 = vrot.slane %v584_v27, 4  ;;  %v917_v33 = vpack.c.bf16 %v708_v28, %v706_v25  ;;  %v919_v34 = vpack.c.bf16 %v707_v30, %v705_v29 }
  0xe7   : > { %v518_v35 = vpop.permute.xlu1 %517  ;;  %v516_v36 = vpop.permute.xlu0 %515 }
  0xe8   : > { %591 = vst [vmem:[#allocation2 + $0x90] sm:$0xf0] %v587_v31  ;;  %592 = vst [vmem:[#allocation2 + $0x98] sm:$0xf0] %v588_v32  ;;  %v520_v37 = vsel %vm519_vm14, %v516_v36, %v518_v35  ;;  %v521_v38 = vsel %vm519_vm14, %v518_v35, %v516_v36  ;;  %918 = vmatprep.subr.bf16.mxu0 %v917_v33 }
  0xe9   : > { %v528_v39 = vsel %vm230_vm6, %v520_v37, 0.0  ;;  %v529_v40 = vsel %vm523_vm15, %v521_v38, 0.0  ;;  %920 = vmatpush1.bf16.msra.mxu0 %v919_v34  ;;  %vm660_vm14 = vmand %vm601_vm8, %vm271_vm3 }
  0xea   : > { %530 = vst [vmem:[#allocation2 + $0x80] sm:$0xf] %v528_v39  ;;  %531 = vst [vmem:[#allocation2 + $0x88] sm:$0xf] %v529_v40 }
  0xeb   : > { %v556_v41 = vpop.permute.xlu1 %555  ;;  %v554_v42 = vpop.permute.xlu0 %553  ;;  %vm605_vm3 = vmand %vm601_vm8, %vm212_vm10  ;;  %vm679_vm10 = vcmp.lt.s32.totalorder %v1268_v6, 94 }
  0xec   : > { %v558_v43 = vsel %vm557_vm2, %v554_v42, %v556_v41  ;;  %v559_v44 = vsel %vm557_vm2, %v556_v41, %v554_v42 }
  0xed   : > { %v566_v45 = vsel %vm270_vm1, %v558_v43, 0.0  ;;  %v567_v46 = vsel %vm561_vm4, %v559_v44, 0.0 }
  0xee   : > { %568 = vst [vmem:[#allocation2 + $0x90] sm:$0xf] %v566_v45  ;;  %569 = vst [vmem:[#allocation2 + $0x98] sm:$0xf] %v567_v46 }
  0xef   : > { %v617_v47 = vpop.permute.xlu1 %616  ;;  %v615_v48 = vpop.permute.xlu0 %614 }
  0xf0   : > { %v619_v49 = vsel %vm618_vm12, %v615_v48, %v617_v47  ;;  %v620_v50 = vsel %vm618_vm12, %v617_v47, %v615_v48 }
  0xf1   : > { %v627_v51 = vsel %vm230_vm6, %v619_v49, 0.0  ;;  %v628_v52 = vsel %vm622_vm13, %v620_v50, 0.0  ;;  %v710_v59 = vld [vmem:[#allocation2 + $0x88] sm:$0xff]  ;;  %vm597_vm6 = vcmp.lt.s32.totalorder %v1268_v6, 98  ;;  %v709_v63 = vld [vmem:[#allocation2 + $0x80] sm:$0xff] }
  0xf2   : > { %v631_v53 = vrot.slane %v627_v51, 4  ;;  %v632_v54 = vrot.slane %v628_v52, 4 }
  0xf3   : > { %v655_v55 = vpop.permute.xlu1 %654  ;;  %v653_v56 = vpop.permute.xlu0 %652 }
  0xf4   : > { %635 = vst [vmem:[#allocation2 + $0xa0] sm:$0xf0] %v631_v53  ;;  %636 = vst [vmem:[#allocation2 + $0xa8] sm:$0xf0] %v632_v54  ;;  %v657_v57 = vsel %vm656_vm0, %v653_v56, %v655_v55  ;;  %v658_v58 = vsel %vm656_vm0, %v655_v55, %v653_v56 }
  0xf5   : > { %v665_v60 = vsel %vm270_vm1, %v657_v57, 0.0  ;;  %v666_v61 = vsel %vm660_vm14, %v658_v58, 0.0  ;;  %v712_v62 = vld [vmem:[#allocation2 + $0x98] sm:$0xff]  ;;  %v711_v0 = vld [vmem:[#allocation2 + $0x90] sm:$0xff]  ;;  %vm641_vm1 = vcmp.lt.s32.totalorder %v1268_v6, 96 }
  0xf6   : > { %v669_v1 = vrot.slane %v665_v60, 4  ;;  %v670_v2 = vrot.slane %v666_v61, 4  ;;  %v921_v3 = vpack.c.bf16 %v712_v62, %v710_v59  ;;  %v923_v4 = vpack.c.bf16 %v711_v0, %v709_v63 }
  0xf7   : > { %v596_v5 = vpop.permute.xlu1 %595  ;;  %v594_v10 = vpop.permute.xlu0 %593 }
  0xf8   : > { %673 = vst [vmem:[#allocation2 + $0xb0] sm:$0xf0] %v669_v1  ;;  %674 = vst [vmem:[#allocation2 + $0xb8] sm:$0xf0] %v670_v2  ;;  %v598_v11 = vsel %vm597_vm6, %v594_v10, %v596_v5  ;;  %v599_v12 = vsel %vm597_vm6, %v596_v5, %v594_v10  ;;  %922 = vmatprep.subr.bf16.mxu0 %v921_v3 }
  0xf9   : > { %v610_v13 = vsel %vm211_vm5, %v598_v11, 0.0  ;;  %v611_v14 = vsel %vm605_vm3, %v599_v12, 0.0  ;;  %924 = vmatpush1.bf16.msra.mxu0 %v923_v4  ;;  %vm683_vm5 = vmand %vm601_vm8, %vm296_vm9 }
  0xfa   : > { %612 = vst [vmem:[#allocation2 + $0xa0] sm:$0xf] %v610_v13  ;;  %613 = vst [vmem:[#allocation2 + $0xa8] sm:$0xf] %v611_v14 }
  0xfb   : > { %v640_v15 = vpop.permute.xlu1 %639  ;;  %v638_v16 = vpop.permute.xlu0 %637 }
  0xfc   : > { %v642_v17 = vsel %vm641_vm1, %v638_v16, %v640_v15  ;;  %v643_v18 = vsel %vm641_vm1, %v640_v15, %v638_v16 }
  0xfd   : > { %v649_v19 = vsel %vm601_vm8, %v643_v18, 0.0  ;;  %650 = vst [vmem:[#allocation2 + $0xb0] sm:$0xf] %v642_v17 }
  0xfe   : > { %651 = vst [vmem:[#allocation2 + $0xb8] sm:$0xf] %v649_v19 }
  0xff   : > { %v678_v20 = vpop.permute.xlu1 %677  ;;  %v676_v21 = vpop.permute.xlu0 %675 }
 0x100   : > { %v680_v22 = vsel %vm679_vm10, %v676_v21, %v678_v20  ;;  %v681_v23 = vsel %vm679_vm10, %v678_v20, %v676_v21 }
 0x101   : > { %v688_v24 = vsel %vm295_vm7, %v680_v22, 0.0  ;;  %v689_v25 = vsel %vm683_vm5, %v681_v23, 0.0  ;;  %v714_v27 = vld [vmem:[#allocation2 + $0xa8] sm:$0xff]  ;;  %v713_v29 = vld [vmem:[#allocation2 + $0xa0] sm:$0xff]  ;;  %vm725_vm7 = vcmask 818176  }
 0x102   : > { %690 = vst [vmem:[#allocation2 + $0xc0] sm:$0xf] %v688_v24  ;;  %691 = vst [vmem:[#allocation2 + $0xc8] sm:$0xf] %v689_v25 }
 0x104   : > { %v715_v26 = vld [vmem:[#allocation2 + $0xb0] sm:$0xff] }
 0x105   : > { %v716_v28 = vld [vmem:[#allocation2 + $0xb8] sm:$0xff]  ;;  %v927_v30 = vpack.c.bf16 %v715_v26, %v713_v29 }
 0x106   : > { %v925_v6 = vpack.c.bf16 %v716_v28, %v714_v27 }
 0x108   : > { %926 = vmatprep.subr.bf16.mxu0 %v925_v6 }
 0x109   : > { %928 = vmatpush1.bf16.msra.mxu0 %v927_v30  ;;  %v718_v7 = vld [vmem:[#allocation2 + $0xc8] sm:$0xf]  ;;  %v717_v9 = vld [vmem:[#allocation2 + $0xc0] sm:$0xf] }
 0x10a   : > { %898 = vmatprep.subr.msk.mxu0 %vm729_vm11, %v718_v7 }
 0x10d   : > { %899 = vmatpush1.msk.msra.mxu0 %vm729_vm11, %v717_v9 }
 0x10e   : > { %900 = vmatmul.mubr.msk.f32.vlgmr.msra.gmra.mrb[0].mxu0 %vm725_vm7, %v692_v8 }
 0x110   : > { %v723_v31 = vpop.permute.xlu0 %722 }
 0x1e1   : > { %v802_v32 = vpop.f32.mrb[0].mxu0 }
 0x1e2   : > { %v803_v33 = vadd.f32 %v802_v32, %v723_v31  ;;  %v804_v34 = vpop.f32.mrb[1].mxu0 }
 0x1e3   : > { %v805_v35 = vadd.f32 %v804_v34, %v723_v31 }
 0x1e4   : > { %v807_v36 = vmax.f32 %v803_v33, 0.0 }
 0x1e5   : > { %v808_v37 = vmax.f32 %v805_v35, 0.0 }
 0x1e6   : > { %v813_v38 = vrot.slane %v807_v36, 4 }
 0x1e7   : > { %v814_v39 = vrot.slane %v808_v37, 4 }
 0x1e8   : > { %817 = vst [vmem:[%s1262_s4 + $0x10] ss:$-12 sps:$4 sm:$0xff] %v813_v38  }
 0x1e9   : > { %818 = vst [vmem:[%s1262_s4 + $0x18] ss:$-12 sps:$4 sm:$0xff] %v814_v39  }
 0x1ea PF: > { %p13_p8 = scmp.ge.s32.totalorder %s1131_s17, 4   ;;  %s1481_s12 = smov %s1052_s13 }
 0x1eb   : > { %s1482_s13 = smov %s1056_s14  ;;  %s1483_s14 = smov %s1141_s20 }
 0x1ec   : > { %s1484_s15 = smov %s1131_s17  ;;  %15 = sbr.rel (!%p13_p8) target bundleno = 3 (0x3), region = 72 }
 0x1f3   :  { %842 = vsyncpa [#allocation4], 1 }
 0x1f4   :  { %844 = vsyncpa [#allocation4 + $0x1], 1 }

</bundles_post_ra>
